<compile_context>
chip_gen: v6e
topology: v6e:2x2x1
jax: 0.10.0
libtpu: 0.0.40
codegen_flags: <defaults>
</compile_context>

<pallas_src>
import functools
import math

import jax
import jax.numpy as jnp
from jax.experimental import pallas as pl
from jax.experimental.pallas import tpu as pltpu

HIDDEN = 32
NUM_HEADS = 4
SEQ = 8
BATCH = 2
EPS = 1e-5


def encoder_kernel(x_ref, wqkv_ref, bqkv_ref, wo_ref, w1_ref, b1_ref, w2_ref,
                   vec_ref, o_ref, *, num_heads):
    _, L, E = x_ref.shape
    H = num_heads
    dh = E // H

    x = x_ref[0]                                                       # (L, E)

    # ---- fused QKV projection: one wide MXU matmul (scale already folded in) ----
    qkv = jnp.dot(x, wqkv_ref[...],
                  preferred_element_type=jnp.float32) + bqkv_ref[...]  # (L, 3E)

    # ---- per-head attention core (softmax is per head; H statically unrolled,
    #      2-D ops only). dh=8 contractions are pad-bound regardless of layout. ----
    ctx_parts = []
    for h in range(H):
        qh = qkv[:, h * dh:(h + 1) * dh]                               # (L, dh) scaled
        kh = qkv[:, E + h * dh:E + (h + 1) * dh]                       # (L, dh)
        vh = qkv[:, 2 * E + h * dh:2 * E + (h + 1) * dh]               # (L, dh)
        s = jax.lax.dot_general(qh, kh, (((1,), (1,)), ((), ())),
                                preferred_element_type=jnp.float32)    # (L, L)
        s = s - jnp.max(s, axis=-1, keepdims=True)
        p = jnp.exp(s)
        p = p * pl.reciprocal(jnp.sum(p, axis=-1, keepdims=True), approx=True)
        ctx_parts.append(jnp.dot(p, vh, preferred_element_type=jnp.float32))
    ctx = jnp.concatenate(ctx_parts, axis=-1)                          # (L, E)

    # ---- small bias / gain vectors (one packed (6, E) slab) ----
    vecs = vec_ref[...]
    b_o, g1, beta1 = vecs[0:1], vecs[1:2], vecs[2:3]
    b_ff2, g2, beta2 = vecs[3:4], vecs[4:5], vecs[5:6]

    # ---- output projection: one (L,E)@(E,E) matmul on the head-merged context ----
    attn = jnp.dot(ctx, wo_ref[...], preferred_element_type=jnp.float32) + b_o

    # dropout -> identity (eval mode)

    # ---- residual + LayerNorm 1 ----
    x1 = x + attn
    mu1 = jnp.mean(x1, axis=-1, keepdims=True)
    var1 = jnp.mean((x1 - mu1) ** 2, axis=-1, keepdims=True)
    x1 = (x1 - mu1) * jax.lax.rsqrt(var1 + EPS) * g1 + beta1

    # ---- feed forward ----
    h1 = jnp.dot(x1, w1_ref[...], preferred_element_type=jnp.float32) + b1_ref[...]
    h1 = jnp.maximum(h1, 0.0)
    ff = jnp.dot(h1, w2_ref[...], preferred_element_type=jnp.float32) + b_ff2

    # dropout -> identity (eval mode)

    # ---- residual + LayerNorm 2 ----
    x2 = x1 + ff
    mu2 = jnp.mean(x2, axis=-1, keepdims=True)
    var2 = jnp.mean((x2 - mu2) ** 2, axis=-1, keepdims=True)
    o_ref[0] = (x2 - mu2) * jax.lax.rsqrt(var2 + EPS) * g2 + beta2


def transformer_encoder_layer(inputs_lne, params, *, num_heads=NUM_HEADS):
    """inputs_lne: (L, N, E) — same layout as the PyTorch module's forward()."""
    L, N, E = inputs_lne.shape
    H = num_heads
    dh = E // H
    scale = 1.0 / math.sqrt(dh)

    # Batch becomes the (parallel) grid axis: (L, N, E) -> (N, L, E).
    x_nle = jnp.transpose(inputs_lne, (1, 0, 2))

    # ---- host-side weight packing (one-time, tiny) ----
    wqkv = jnp.concatenate([params["wq"].T * scale,      # scale folded into Wq
                            params["wk"].T,
                            params["wv"].T], axis=1)                    # (E, 3E)
    bqkv = jnp.concatenate([params["bq"] * scale,         # and into bq
                            params["bk"],
                            params["bv"]]).reshape(1, 3 * E)            # (1, 3E)
    wo_t = params["wo"].T                                               # (E, E)
    w1t = params["w1"].T                                                # (E, 4E)
    b1 = params["b1"].reshape(1, -1)                                    # (1, 4E)
    w2t = params["w2"].T                                                # (4E, E)
    vec6 = jnp.stack([params["bo"], params["g1"], params["beta1"],
                      params["b2"], params["g2"], params["beta2"]], axis=0)  # (6, E)

    resident = lambda b: (0, 0)   # weights: same block every grid step -> stay in VMEM

    out_nle = pl.pallas_call(
        functools.partial(encoder_kernel, num_heads=H),
        out_shape=jax.ShapeDtypeStruct((N, L, E), jnp.float32),
        grid_spec=pltpu.PrefetchScalarGridSpec(
            num_scalar_prefetch=0,
            grid=(N,),
            in_specs=[
                pl.BlockSpec((1, L, E), lambda b: (b, 0, 0)),   # x (per-batch block)
                pl.BlockSpec((E, 3 * E), resident),             # fused QKV weight
                pl.BlockSpec((1, 3 * E), resident),             # fused QKV bias
                pl.BlockSpec((E, E), resident),                 # Wo^T
                pl.BlockSpec((E, 4 * E), resident),             # W1^T
                pl.BlockSpec((1, 4 * E), resident),             # b1
                pl.BlockSpec((4 * E, E), resident),             # W2^T
                pl.BlockSpec((6, E), resident),                 # packed bias/gain slab
            ],
            out_specs=pl.BlockSpec((1, L, E), lambda b: (b, 0, 0)),
        ),
        compiler_params=pltpu.CompilerParams(
            dimension_semantics=("parallel",),
            vmem_limit_bytes=64 * 1024 * 1024,
        ),
    )(x_nle, wqkv, bqkv, wo_t, w1t, b1, w2t, vec6)

    return jnp.transpose(out_nle, (1, 0, 2))


# ---------------- pure-JAX reference (mirrors PyTorch eval-mode math) ----------------
def reference(inputs_lne, params, *, num_heads=NUM_HEADS):
    L, N, E = inputs_lne.shape
    dh = E // num_heads
    x = jnp.transpose(inputs_lne, (1, 0, 2))      # (B, L, E)

    q = x @ params["wq"].T + params["bq"]
    k = x @ params["wk"].T + params["bk"]
    v = x @ params["wv"].T + params["bv"]

    def split(t):  # (B, L, E) -> (B, H, L, dh)
        return t.reshape(N, L, num_heads, dh).transpose(0, 2, 1, 3)

    qh, kh, vh = split(q), split(k), split(v)
    s = jnp.einsum("bhqd,bhkd->bhqk", qh * (1.0 / math.sqrt(dh)), kh)
    p = jax.nn.softmax(s, axis=-1)
    a = jnp.einsum("bhqk,bhkd->bhqd", p, vh)
    a = a.transpose(0, 2, 1, 3).reshape(N, L, E)
    attn = a @ params["wo"].T + params["bo"]

    def ln(z, g, b):
        mu = jnp.mean(z, -1, keepdims=True)
        var = jnp.mean((z - mu) ** 2, -1, keepdims=True)
        return (z - mu) / jnp.sqrt(var + EPS) * g + b

    x1 = ln(x + attn, params["g1"], params["beta1"])
    ff = jnp.maximum(x1 @ params["w1"].T + params["b1"], 0.0) @ params["w2"].T + params["b2"]
    x2 = ln(x1 + ff, params["g2"], params["beta2"])
    return jnp.transpose(x2, (1, 0, 2))


def init_params(key, hidden=HIDDEN):
    ks = jax.random.split(key, 12)
    s = 0.02
    E, F = hidden, 4 * hidden
    return {
        "wq": jax.random.normal(ks[0], (E, E), jnp.float32) * s,
        "wk": jax.random.normal(ks[1], (E, E), jnp.float32) * s,
        "wv": jax.random.normal(ks[2], (E, E), jnp.float32) * s,
        "bq": jax.random.normal(ks[3], (E,), jnp.float32) * s,
        "bk": jax.random.normal(ks[4], (E,), jnp.float32) * s,
        "bv": jax.random.normal(ks[5], (E,), jnp.float32) * s,
        "wo": jax.random.normal(ks[6], (E, E), jnp.float32) * s,
        "bo": jax.random.normal(ks[7], (E,), jnp.float32) * s,
        "g1": jnp.ones((E,), jnp.float32),
        "beta1": jnp.zeros((E,), jnp.float32),
        "w1": jax.random.normal(ks[8], (F, E), jnp.float32) * s,
        "b1": jax.random.normal(ks[9], (F,), jnp.float32) * s,
        "w2": jax.random.normal(ks[10], (E, F), jnp.float32) * s,
        "b2": jax.random.normal(ks[11], (E,), jnp.float32) * s,
        "g2": jnp.ones((E,), jnp.float32),
        "beta2": jnp.zeros((E,), jnp.float32),
    }


if __name__ == "__main__":
    key = jax.random.PRNGKey(0)
    k_x, k_p = jax.random.split(key)
    # (seq, batch, hidden) — PyTorch nn.MultiheadAttention default layout
    x = jax.random.normal(k_x, (SEQ, BATCH, HIDDEN), jnp.float32)
    params = init_params(k_p)

    out = jax.jit(transformer_encoder_layer)(x, params)
    out = jax.block_until_ready(out)

    ref = reference(x, params)
    assert out.shape == (SEQ, BATCH, HIDDEN)
    # tolerance loosened slightly vs 1e-4 for the approx EUP reciprocal in softmax
    assert jnp.allclose(out, ref, atol=1e-3, rtol=1e-3), "mismatch vs JAX reference"
    print("KERNEL_OK")
</pallas_src>

<mosaic_0001>
module attributes {stable_mosaic.version = 11 : i64} {
  func.func @encoder_kernel(%arg0: i32, %arg1: memref<1x8x32xf32, #tpu.memory_space<vmem>>, %arg2: memref<32x96xf32, #tpu.memory_space<vmem>>, %arg3: memref<1x96xf32, #tpu.memory_space<vmem>>, %arg4: memref<32x32xf32, #tpu.memory_space<vmem>>, %arg5: memref<32x128xf32, #tpu.memory_space<vmem>>, %arg6: memref<1x128xf32, #tpu.memory_space<vmem>>, %arg7: memref<128x32xf32, #tpu.memory_space<vmem>>, %arg8: memref<6x32xf32, #tpu.memory_space<vmem>>, %arg9: memref<1x8x32xf32, #tpu.memory_space<vmem>>) attributes {dimension_semantics = [#tpu.dimension_semantics<parallel>], iteration_bounds = array<i64: 2>, scalar_prefetch = 0 : i64, scratch_operands = 0 : i64, tpu.core_type = #tpu.core_type<tc>, window_params = [{transform_indices = @transform_0, window_bounds = array<i64: 1, 8, 32>}, {pipeline_mode = #tpu.pipeline_mode<synchronous>, transform_indices = @transform_1, window_bounds = array<i64: 32, 96>}, {pipeline_mode = #tpu.pipeline_mode<synchronous>, transform_indices = @transform_2, window_bounds = array<i64: 1, 96>}, {pipeline_mode = #tpu.pipeline_mode<synchronous>, transform_indices = @transform_3, window_bounds = array<i64: 32, 32>}, {pipeline_mode = #tpu.pipeline_mode<synchronous>, transform_indices = @transform_4, window_bounds = array<i64: 32, 128>}, {pipeline_mode = #tpu.pipeline_mode<synchronous>, transform_indices = @transform_5, window_bounds = array<i64: 1, 128>}, {pipeline_mode = #tpu.pipeline_mode<synchronous>, transform_indices = @transform_6, window_bounds = array<i64: 128, 32>}, {pipeline_mode = #tpu.pipeline_mode<synchronous>, transform_indices = @transform_7, window_bounds = array<i64: 6, 32>}, {transform_indices = @transform_8, window_bounds = array<i64: 1, 8, 32>}]} {
    %c0 = arith.constant 0 : index
    %c0_0 = arith.constant 0 : index
    %c0_1 = arith.constant 0 : index
    %0 = vector.load %arg1[%c0, %c0_0, %c0_1] : memref<1x8x32xf32, #tpu.memory_space<vmem>>, vector<1x8x32xf32>
    %1 = vector.shape_cast %0 : vector<1x8x32xf32> to vector<8x32xf32>
    %c0_2 = arith.constant 0 : index
    %c0_3 = arith.constant 0 : index
    %2 = vector.load %arg2[%c0_2, %c0_3] : memref<32x96xf32, #tpu.memory_space<vmem>>, vector<32x96xf32>
    %cst = arith.constant dense<0.000000e+00> : vector<8x96xf32>
    %3 = tpu.matmul %1, %2, %cst {dimension_numbers = #tpu.dot_dimension_numbers<[1], [0], [0], [1], [0, 0, 1, 1], [], []>} : vector<8x32xf32>, vector<32x96xf32>, vector<8x96xf32> -> vector<8x96xf32>
    %c0_4 = arith.constant 0 : index
    %c0_5 = arith.constant 0 : index
    %4 = vector.load %arg3[%c0_4, %c0_5] : memref<1x96xf32, #tpu.memory_space<vmem>>, vector<1x96xf32>
    %5 = vector.broadcast %4 : vector<1x96xf32> to vector<8x96xf32>
    %6 = arith.addf %3, %5 : vector<8x96xf32>
    %7 = vector.extract_strided_slice %6 {offsets = [0, 0], sizes = [8, 8], strides = [1, 1]} : vector<8x96xf32> to vector<8x8xf32>
    %8 = vector.extract_strided_slice %6 {offsets = [0, 32], sizes = [8, 8], strides = [1, 1]} : vector<8x96xf32> to vector<8x8xf32>
    %9 = vector.extract_strided_slice %6 {offsets = [0, 64], sizes = [8, 8], strides = [1, 1]} : vector<8x96xf32> to vector<8x8xf32>
    %cst_6 = arith.constant dense<0.000000e+00> : vector<8x8xf32>
    %10 = tpu.matmul %7, %8, %cst_6 {dimension_numbers = #tpu.dot_dimension_numbers<[1], [1], [0], [0], [0, 0, 1, 0], [], []>} : vector<8x8xf32>, vector<8x8xf32>, vector<8x8xf32> -> vector<8x8xf32>
    %cst_7 = arith.constant dense<0xFF800000> : vector<8xf32>
    %11 = vector.multi_reduction <maximumf>, %10, %cst_7 [1] : vector<8x8xf32> to vector<8xf32>
    %12 = vector.shape_cast %11 : vector<8xf32> to vector<8x1xf32>
    %13 = vector.broadcast %12 : vector<8x1xf32> to vector<8x8xf32>
    %14 = arith.subf %10, %13 : vector<8x8xf32>
    %15 = math.exp %14 : vector<8x8xf32>
    %cst_8 = arith.constant dense<0.000000e+00> : vector<8xf32>
    %16 = vector.multi_reduction <add>, %15, %cst_8 [1] : vector<8x8xf32> to vector<8xf32>
    %17 = vector.shape_cast %16 : vector<8xf32> to vector<8x1xf32>
    %18 = tpu.reciprocal %17 {approx = true} : vector<8x1xf32> -> vector<8x1xf32>
    %19 = vector.broadcast %18 : vector<8x1xf32> to vector<8x8xf32>
    %20 = arith.mulf %15, %19 : vector<8x8xf32>
    %cst_9 = arith.constant dense<0.000000e+00> : vector<8x8xf32>
    %21 = tpu.matmul %20, %9, %cst_9 {dimension_numbers = #tpu.dot_dimension_numbers<[1], [0], [0], [1], [0, 0, 1, 1], [], []>} : vector<8x8xf32>, vector<8x8xf32>, vector<8x8xf32> -> vector<8x8xf32>
    %22 = vector.extract_strided_slice %6 {offsets = [0, 8], sizes = [8, 8], strides = [1, 1]} : vector<8x96xf32> to vector<8x8xf32>
    %23 = vector.extract_strided_slice %6 {offsets = [0, 40], sizes = [8, 8], strides = [1, 1]} : vector<8x96xf32> to vector<8x8xf32>
    %24 = vector.extract_strided_slice %6 {offsets = [0, 72], sizes = [8, 8], strides = [1, 1]} : vector<8x96xf32> to vector<8x8xf32>
    %cst_10 = arith.constant dense<0.000000e+00> : vector<8x8xf32>
    %25 = tpu.matmul %22, %23, %cst_10 {dimension_numbers = #tpu.dot_dimension_numbers<[1], [1], [0], [0], [0, 0, 1, 0], [], []>} : vector<8x8xf32>, vector<8x8xf32>, vector<8x8xf32> -> vector<8x8xf32>
    %cst_11 = arith.constant dense<0xFF800000> : vector<8xf32>
    %26 = vector.multi_reduction <maximumf>, %25, %cst_11 [1] : vector<8x8xf32> to vector<8xf32>
    %27 = vector.shape_cast %26 : vector<8xf32> to vector<8x1xf32>
    %28 = vector.broadcast %27 : vector<8x1xf32> to vector<8x8xf32>
    %29 = arith.subf %25, %28 : vector<8x8xf32>
    %30 = math.exp %29 : vector<8x8xf32>
    %cst_12 = arith.constant dense<0.000000e+00> : vector<8xf32>
    %31 = vector.multi_reduction <add>, %30, %cst_12 [1] : vector<8x8xf32> to vector<8xf32>
    %32 = vector.shape_cast %31 : vector<8xf32> to vector<8x1xf32>
    %33 = tpu.reciprocal %32 {approx = true} : vector<8x1xf32> -> vector<8x1xf32>
    %34 = vector.broadcast %33 : vector<8x1xf32> to vector<8x8xf32>
    %35 = arith.mulf %30, %34 : vector<8x8xf32>
    %cst_13 = arith.constant dense<0.000000e+00> : vector<8x8xf32>
    %36 = tpu.matmul %35, %24, %cst_13 {dimension_numbers = #tpu.dot_dimension_numbers<[1], [0], [0], [1], [0, 0, 1, 1], [], []>} : vector<8x8xf32>, vector<8x8xf32>, vector<8x8xf32> -> vector<8x8xf32>
    %37 = vector.extract_strided_slice %6 {offsets = [0, 16], sizes = [8, 8], strides = [1, 1]} : vector<8x96xf32> to vector<8x8xf32>
    %38 = vector.extract_strided_slice %6 {offsets = [0, 48], sizes = [8, 8], strides = [1, 1]} : vector<8x96xf32> to vector<8x8xf32>
    %39 = vector.extract_strided_slice %6 {offsets = [0, 80], sizes = [8, 8], strides = [1, 1]} : vector<8x96xf32> to vector<8x8xf32>
    %cst_14 = arith.constant dense<0.000000e+00> : vector<8x8xf32>
    %40 = tpu.matmul %37, %38, %cst_14 {dimension_numbers = #tpu.dot_dimension_numbers<[1], [1], [0], [0], [0, 0, 1, 0], [], []>} : vector<8x8xf32>, vector<8x8xf32>, vector<8x8xf32> -> vector<8x8xf32>
    %cst_15 = arith.constant dense<0xFF800000> : vector<8xf32>
    %41 = vector.multi_reduction <maximumf>, %40, %cst_15 [1] : vector<8x8xf32> to vector<8xf32>
    %42 = vector.shape_cast %41 : vector<8xf32> to vector<8x1xf32>
    %43 = vector.broadcast %42 : vector<8x1xf32> to vector<8x8xf32>
    %44 = arith.subf %40, %43 : vector<8x8xf32>
    %45 = math.exp %44 : vector<8x8xf32>
    %cst_16 = arith.constant dense<0.000000e+00> : vector<8xf32>
    %46 = vector.multi_reduction <add>, %45, %cst_16 [1] : vector<8x8xf32> to vector<8xf32>
    %47 = vector.shape_cast %46 : vector<8xf32> to vector<8x1xf32>
    %48 = tpu.reciprocal %47 {approx = true} : vector<8x1xf32> -> vector<8x1xf32>
    %49 = vector.broadcast %48 : vector<8x1xf32> to vector<8x8xf32>
    %50 = arith.mulf %45, %49 : vector<8x8xf32>
    %cst_17 = arith.constant dense<0.000000e+00> : vector<8x8xf32>
    %51 = tpu.matmul %50, %39, %cst_17 {dimension_numbers = #tpu.dot_dimension_numbers<[1], [0], [0], [1], [0, 0, 1, 1], [], []>} : vector<8x8xf32>, vector<8x8xf32>, vector<8x8xf32> -> vector<8x8xf32>
    %52 = vector.extract_strided_slice %6 {offsets = [0, 24], sizes = [8, 8], strides = [1, 1]} : vector<8x96xf32> to vector<8x8xf32>
    %53 = vector.extract_strided_slice %6 {offsets = [0, 56], sizes = [8, 8], strides = [1, 1]} : vector<8x96xf32> to vector<8x8xf32>
    %54 = vector.extract_strided_slice %6 {offsets = [0, 88], sizes = [8, 8], strides = [1, 1]} : vector<8x96xf32> to vector<8x8xf32>
    %cst_18 = arith.constant dense<0.000000e+00> : vector<8x8xf32>
    %55 = tpu.matmul %52, %53, %cst_18 {dimension_numbers = #tpu.dot_dimension_numbers<[1], [1], [0], [0], [0, 0, 1, 0], [], []>} : vector<8x8xf32>, vector<8x8xf32>, vector<8x8xf32> -> vector<8x8xf32>
    %cst_19 = arith.constant dense<0xFF800000> : vector<8xf32>
    %56 = vector.multi_reduction <maximumf>, %55, %cst_19 [1] : vector<8x8xf32> to vector<8xf32>
    %57 = vector.shape_cast %56 : vector<8xf32> to vector<8x1xf32>
    %58 = vector.broadcast %57 : vector<8x1xf32> to vector<8x8xf32>
    %59 = arith.subf %55, %58 : vector<8x8xf32>
    %60 = math.exp %59 : vector<8x8xf32>
    %cst_20 = arith.constant dense<0.000000e+00> : vector<8xf32>
    %61 = vector.multi_reduction <add>, %60, %cst_20 [1] : vector<8x8xf32> to vector<8xf32>
    %62 = vector.shape_cast %61 : vector<8xf32> to vector<8x1xf32>
    %63 = tpu.reciprocal %62 {approx = true} : vector<8x1xf32> -> vector<8x1xf32>
    %64 = vector.broadcast %63 : vector<8x1xf32> to vector<8x8xf32>
    %65 = arith.mulf %60, %64 : vector<8x8xf32>
    %cst_21 = arith.constant dense<0.000000e+00> : vector<8x8xf32>
    %66 = tpu.matmul %65, %54, %cst_21 {dimension_numbers = #tpu.dot_dimension_numbers<[1], [0], [0], [1], [0, 0, 1, 1], [], []>} : vector<8x8xf32>, vector<8x8xf32>, vector<8x8xf32> -> vector<8x8xf32>
    %67 = tpu.concatenate %21, %36, %51, %66 in 1 : vector<8x8xf32>, vector<8x8xf32>, vector<8x8xf32>, vector<8x8xf32> -> vector<8x32xf32>
    %c0_22 = arith.constant 0 : index
    %c0_23 = arith.constant 0 : index
    %68 = vector.load %arg8[%c0_22, %c0_23] : memref<6x32xf32, #tpu.memory_space<vmem>>, vector<6x32xf32>
    %69 = vector.extract_strided_slice %68 {offsets = [0, 0], sizes = [1, 32], strides = [1, 1]} : vector<6x32xf32> to vector<1x32xf32>
    %70 = vector.extract_strided_slice %68 {offsets = [1, 0], sizes = [1, 32], strides = [1, 1]} : vector<6x32xf32> to vector<1x32xf32>
    %71 = vector.extract_strided_slice %68 {offsets = [2, 0], sizes = [1, 32], strides = [1, 1]} : vector<6x32xf32> to vector<1x32xf32>
    %72 = vector.extract_strided_slice %68 {offsets = [3, 0], sizes = [1, 32], strides = [1, 1]} : vector<6x32xf32> to vector<1x32xf32>
    %73 = vector.extract_strided_slice %68 {offsets = [4, 0], sizes = [1, 32], strides = [1, 1]} : vector<6x32xf32> to vector<1x32xf32>
    %74 = vector.extract_strided_slice %68 {offsets = [5, 0], sizes = [1, 32], strides = [1, 1]} : vector<6x32xf32> to vector<1x32xf32>
    %c0_24 = arith.constant 0 : index
    %c0_25 = arith.constant 0 : index
    %75 = vector.load %arg4[%c0_24, %c0_25] : memref<32x32xf32, #tpu.memory_space<vmem>>, vector<32x32xf32>
    %cst_26 = arith.constant dense<0.000000e+00> : vector<8x32xf32>
    %76 = tpu.matmul %67, %75, %cst_26 {dimension_numbers = #tpu.dot_dimension_numbers<[1], [0], [0], [1], [0, 0, 1, 1], [], []>} : vector<8x32xf32>, vector<32x32xf32>, vector<8x32xf32> -> vector<8x32xf32>
    %77 = vector.broadcast %69 : vector<1x32xf32> to vector<8x32xf32>
    %78 = arith.addf %76, %77 : vector<8x32xf32>
    %79 = arith.addf %1, %78 : vector<8x32xf32>
    %cst_27 = arith.constant dense<0.000000e+00> : vector<8xf32>
    %80 = vector.multi_reduction <add>, %79, %cst_27 [1] : vector<8x32xf32> to vector<8xf32>
    %81 = vector.shape_cast %80 : vector<8xf32> to vector<8x1xf32>
    %cst_28 = arith.constant 3.200000e+01 : f32
    %82 = vector.broadcast %cst_28 : f32 to vector<8x1xf32>
    %83 = arith.divf %81, %82 : vector<8x1xf32>
    %84 = vector.broadcast %83 : vector<8x1xf32> to vector<8x32xf32>
    %85 = arith.subf %79, %84 : vector<8x32xf32>
    %86 = arith.mulf %85, %85 : vector<8x32xf32>
    %cst_29 = arith.constant dense<0.000000e+00> : vector<8xf32>
    %87 = vector.multi_reduction <add>, %86, %cst_29 [1] : vector<8x32xf32> to vector<8xf32>
    %88 = vector.shape_cast %87 : vector<8xf32> to vector<8x1xf32>
    %cst_30 = arith.constant 3.200000e+01 : f32
    %89 = vector.broadcast %cst_30 : f32 to vector<8x1xf32>
    %90 = arith.divf %88, %89 : vector<8x1xf32>
    %91 = vector.broadcast %83 : vector<8x1xf32> to vector<8x32xf32>
    %92 = arith.subf %79, %91 : vector<8x32xf32>
    %cst_31 = arith.constant 9.99999974E-6 : f32
    %93 = vector.broadcast %cst_31 : f32 to vector<8x1xf32>
    %94 = arith.addf %90, %93 : vector<8x1xf32>
    %95 = math.rsqrt %94 : vector<8x1xf32>
    %96 = vector.broadcast %95 : vector<8x1xf32> to vector<8x32xf32>
    %97 = arith.mulf %92, %96 : vector<8x32xf32>
    %98 = vector.broadcast %70 : vector<1x32xf32> to vector<8x32xf32>
    %99 = arith.mulf %97, %98 : vector<8x32xf32>
    %100 = vector.broadcast %71 : vector<1x32xf32> to vector<8x32xf32>
    %101 = arith.addf %99, %100 : vector<8x32xf32>
    %c0_32 = arith.constant 0 : index
    %c0_33 = arith.constant 0 : index
    %102 = vector.load %arg5[%c0_32, %c0_33] : memref<32x128xf32, #tpu.memory_space<vmem>>, vector<32x128xf32>
    %cst_34 = arith.constant dense<0.000000e+00> : vector<8x128xf32>
    %103 = tpu.matmul %101, %102, %cst_34 {dimension_numbers = #tpu.dot_dimension_numbers<[1], [0], [0], [1], [0, 0, 1, 1], [], []>} : vector<8x32xf32>, vector<32x128xf32>, vector<8x128xf32> -> vector<8x128xf32>
    %c0_35 = arith.constant 0 : index
    %c0_36 = arith.constant 0 : index
    %104 = vector.load %arg6[%c0_35, %c0_36] : memref<1x128xf32, #tpu.memory_space<vmem>>, vector<1x128xf32>
    %105 = vector.broadcast %104 : vector<1x128xf32> to vector<8x128xf32>
    %106 = arith.addf %103, %105 : vector<8x128xf32>
    %cst_37 = arith.constant 0.000000e+00 : f32
    %107 = vector.broadcast %cst_37 : f32 to vector<8x128xf32>
    %108 = arith.maximumf %106, %107 : vector<8x128xf32>
    %c0_38 = arith.constant 0 : index
    %c0_39 = arith.constant 0 : index
    %109 = vector.load %arg7[%c0_38, %c0_39] : memref<128x32xf32, #tpu.memory_space<vmem>>, vector<128x32xf32>
    %cst_40 = arith.constant dense<0.000000e+00> : vector<8x32xf32>
    %110 = tpu.matmul %108, %109, %cst_40 {dimension_numbers = #tpu.dot_dimension_numbers<[1], [0], [0], [1], [0, 0, 1, 1], [], []>} : vector<8x128xf32>, vector<128x32xf32>, vector<8x32xf32> -> vector<8x32xf32>
    %111 = vector.broadcast %72 : vector<1x32xf32> to vector<8x32xf32>
    %112 = arith.addf %110, %111 : vector<8x32xf32>
    %113 = arith.addf %101, %112 : vector<8x32xf32>
    %cst_41 = arith.constant dense<0.000000e+00> : vector<8xf32>
    %114 = vector.multi_reduction <add>, %113, %cst_41 [1] : vector<8x32xf32> to vector<8xf32>
    %115 = vector.shape_cast %114 : vector<8xf32> to vector<8x1xf32>
    %cst_42 = arith.constant 3.200000e+01 : f32
    %116 = vector.broadcast %cst_42 : f32 to vector<8x1xf32>
    %117 = arith.divf %115, %116 : vector<8x1xf32>
    %118 = vector.broadcast %117 : vector<8x1xf32> to vector<8x32xf32>
    %119 = arith.subf %113, %118 : vector<8x32xf32>
    %120 = arith.mulf %119, %119 : vector<8x32xf32>
    %cst_43 = arith.constant dense<0.000000e+00> : vector<8xf32>
    %121 = vector.multi_reduction <add>, %120, %cst_43 [1] : vector<8x32xf32> to vector<8xf32>
    %122 = vector.shape_cast %121 : vector<8xf32> to vector<8x1xf32>
    %cst_44 = arith.constant 3.200000e+01 : f32
    %123 = vector.broadcast %cst_44 : f32 to vector<8x1xf32>
    %124 = arith.divf %122, %123 : vector<8x1xf32>
    %125 = vector.broadcast %117 : vector<8x1xf32> to vector<8x32xf32>
    %126 = arith.subf %113, %125 : vector<8x32xf32>
    %cst_45 = arith.constant 9.99999974E-6 : f32
    %127 = vector.broadcast %cst_45 : f32 to vector<8x1xf32>
    %128 = arith.addf %124, %127 : vector<8x1xf32>
    %129 = math.rsqrt %128 : vector<8x1xf32>
    %130 = vector.broadcast %129 : vector<8x1xf32> to vector<8x32xf32>
    %131 = arith.mulf %126, %130 : vector<8x32xf32>
    %132 = vector.broadcast %73 : vector<1x32xf32> to vector<8x32xf32>
    %133 = arith.mulf %131, %132 : vector<8x32xf32>
    %134 = vector.broadcast %74 : vector<1x32xf32> to vector<8x32xf32>
    %135 = arith.addf %133, %134 : vector<8x32xf32>
    %c0_46 = arith.constant 0 : index
    %c0_47 = arith.constant 0 : index
    %c0_48 = arith.constant 0 : index
    %136 = vector.load %arg9[%c0_46, %c0_47, %c0_48] : memref<1x8x32xf32, #tpu.memory_space<vmem>>, vector<1x8x32xf32>
    %137 = vector.shape_cast %136 : vector<1x8x32xf32> to vector<8x32xf32>
    %138 = vector.shape_cast %135 : vector<8x32xf32> to vector<1x8x32xf32>
    tpu.vector_store %arg9[%c0_46, %c0_47, %c0_48], %138 {strides = array<i32>} : memref<1x8x32xf32, #tpu.memory_space<vmem>>, vector<1x8x32xf32>,
    return
  }
  func.func @transform_0(%arg0: i32) -> (i32, i32, i32) {
    %c0_i32 = arith.constant 0 : i32
    %c0_i32_0 = arith.constant 0 : i32
    %c0_i32_1 = arith.constant 0 : i32
    return %arg0, %c0_i32, %c0_i32_0 : i32, i32, i32
  }
  func.func @transform_1(%arg0: i32) -> (i32, i32) {
    %c0_i32 = arith.constant 0 : i32
    %c0_i32_0 = arith.constant 0 : i32
    %c0_i32_1 = arith.constant 0 : i32
    return %c0_i32, %c0_i32_0 : i32, i32
  }
  func.func @transform_2(%arg0: i32) -> (i32, i32) {
    %c0_i32 = arith.constant 0 : i32
    %c0_i32_0 = arith.constant 0 : i32
    %c0_i32_1 = arith.constant 0 : i32
    return %c0_i32, %c0_i32_0 : i32, i32
  }
  func.func @transform_3(%arg0: i32) -> (i32, i32) {
    %c0_i32 = arith.constant 0 : i32
    %c0_i32_0 = arith.constant 0 : i32
    %c0_i32_1 = arith.constant 0 : i32
    return %c0_i32, %c0_i32_0 : i32, i32
  }
  func.func @transform_4(%arg0: i32) -> (i32, i32) {
    %c0_i32 = arith.constant 0 : i32
    %c0_i32_0 = arith.constant 0 : i32
    %c0_i32_1 = arith.constant 0 : i32
    return %c0_i32, %c0_i32_0 : i32, i32
  }
  func.func @transform_5(%arg0: i32) -> (i32, i32) {
    %c0_i32 = arith.constant 0 : i32
    %c0_i32_0 = arith.constant 0 : i32
    %c0_i32_1 = arith.constant 0 : i32
    return %c0_i32, %c0_i32_0 : i32, i32
  }
  func.func @transform_6(%arg0: i32) -> (i32, i32) {
    %c0_i32 = arith.constant 0 : i32
    %c0_i32_0 = arith.constant 0 : i32
    %c0_i32_1 = arith.constant 0 : i32
    return %c0_i32, %c0_i32_0 : i32, i32
  }
  func.func @transform_7(%arg0: i32) -> (i32, i32) {
    %c0_i32 = arith.constant 0 : i32
    %c0_i32_0 = arith.constant 0 : i32
    %c0_i32_1 = arith.constant 0 : i32
    return %c0_i32, %c0_i32_0 : i32, i32
  }
  func.func @transform_8(%arg0: i32) -> (i32, i32, i32) {
    %c0_i32 = arith.constant 0 : i32
    %c0_i32_0 = arith.constant 0 : i32
    %c0_i32_1 = arith.constant 0 : i32
    return %arg0, %c0_i32, %c0_i32_0 : i32, i32, i32
  }
}

</mosaic_0001>

<bundles_post_ra>
// kernel: transformer_encoder_layer.1
= control target key start
LH: loop header
LB: loop body
LE: loop exit
PB: predicated region body
PF: predicated region fallthrough
CT: control target
= control target key end

     0   :  { %s1719_s27 = smov 0   ;;  %s1959_s0 = inlined_call_operand.vmem [shape: f32[2,8,32], index: 0, kind: input, shape index: {}]   ;;  %s1960_s1 = inlined_call_operand.vmem [shape: f32[32,96], index: 1, kind: input, shape index: {}]   ;;  %s1961_s2 = inlined_call_operand.vmem [shape: f32[1,96], index: 2, kind: input, shape index: {}]   ;;  %s1962_s3 = inlined_call_operand.vmem [shape: f32[32,32], index: 3, kind: input, shape index: {}]   ;;  %s1963_s4 = inlined_call_operand.vmem [shape: f32[32,128], index: 4, kind: input, shape index: {}]   ;;  %s1964_s5 = inlined_call_operand.vmem [shape: f32[1,128], index: 5, kind: input, shape index: {}]   ;;  %s1965_s6 = inlined_call_operand.vmem [shape: f32[128,32], index: 6, kind: input, shape index: {}]   ;;  %s1966_s7 = inlined_call_operand.vmem [shape: f32[6,32], index: 7, kind: input, shape index: {}]   ;;  %s1967_s8 = inlined_call_operand.vmem [shape: f32[2,8,32], index: 8, kind: output, shape index: {}]  }
   0x1 LB: > { %s1424_s28 = sadd.s32 4294967295, %s1656_s27   ;;  %p1428_p0 = scmp.ge.s32.totalorder %s1656_s27, 1  ;;  %s1656_s27 = sphi %s1719_s27, %s18_s27  }
   0x2   : > { %p261_p1 = scmp.lt.s32.totalorder %s1656_s27, 3 }
   0x4   : > { %p262_p2 = pnand %p1428_p0, %p261_p1 }
   0x5   : > { %p293_p3 = scmp.lt.s32.totalorder (!%p262_p2), %s1424_s28, 1  ;;  %s1660_s21 = smov (!%p262_p2), 120  }
   0x6   : > { %265 = sbr.rel (%p262_p2) target bundleno = 2412 (0x96c), region = 52  ;;  %s1661_s22 = smov (!%p262_p2), 96  }
   0x7   : > { %s1662_s23 = smov (!%p262_p2), 80   ;;  %s1663_s24 = smov (!%p262_p2), 88  }
   0x8   : > { %s1664_s25 = smov (!%p262_p2), 72   ;;  %s1665_s26 = smov (!%p262_p2), 112  }
   0x9   : > { %s1666_s29 = smov (!%p262_p2), 104   ;;  %s1667_s30 = smov (!%p262_p2), 56  }
   0xa   : > { %s1668_s9 = smov (!%p262_p2), 64   ;;  %s1669_s10 = smov (!%p262_p2), 48  }
   0xb   : > { %v305_v0 = vld [vmem:[%s1960_s1 + $0x18] sm:$0xff]  ;;  %v1658_v1 = vmov 0.0   ;;  %v304_v2 = vld [vmem:[%s1960_s1 + $0x10] sm:$0xff]  ;;  %vm1659_vm0 = vmmov 0   ;;  %s1969_s28 = smov (!%p293_p3, %s1424_s28), 1  ;;  %v303_v3 = vld [vmem:[%s1960_s1 + $0x8] sm:$0xff] }
   0xc   : > { %1498 = vmatprep.subr.mxu1 %v1658_v1  ;;  %1506 = vmatprep.mubr.msk.f32.mxu1 %vm1659_vm0, %v1658_v1  ;;  %s1429_s13 = sshll.u32 %s1969_s28, 3  ;;  %v302_v4 = vld [vmem:[%s1960_s1] sm:$0xff]  ;;  %vm313_vm1 = vcmask 261120   ;;  %vm390_vm2 = vcmask 64512   ;;  %s1670_s11 = smov 40   ;;  %vm1060_vm3 = vcmask 130048  }
   0xd   : > { %1499 = vmatpush3.msra.mxu1 %v305_v0  ;;  %1519 = vmatprep.subr.mxu0 %v1658_v1  ;;  %s296_s18 = scalar_lea.vmem %s1959_s0, %s1429_s13  ;;  %v1431_v6 = vld [vmem:[%s1961_s2] ss:$0 sm:$0xff]  ;;  %s1671_s15 = smov 8   ;;  %vm1062_vm4 = vcmask 195584  }
   0xe   : > { %1500 = vmatprep.subr.mxu1 %v1658_v1  ;;  %1521 = vmatprep.mubr.msk.f32.mxu0 %vm1659_vm0, %v1658_v1  ;;  %v1755_v5 = vld [vmem:[%s296_s18] sm:$0xff]  ;;  %s300_s12 = scalar_lea.vmem %s1967_s8, %s1429_s13 }
   0xf   : > { %1501 = vmatpush3.msra.mxu1 %v304_v2  ;;  %v1068_v2 = vld [vmem:[%s1962_s3 + $0x18] sm:$0xff] }
  0x10   : > { %1502 = vmatprep.subr.mxu1 %v1658_v1 }
  0x11   : > { %1503 = vmatpush3.msra.mxu1 %v303_v3 }
  0x12   : > { %1504 = vmatprep.subr.mxu1 %v1658_v1 }
  0x13   : > { %1505 = vmatpush3.msra.mxu1 %v302_v4 }
  0x14   : > { %1507 = vmatmul.mubr.msk.f32.vlgmr.msra.gmra.mxu1 %vm313_vm1, %v1755_v5  ;;  %1509 = vmatprep.subr.mxu1 %v1658_v1 }
  0x15   : > { %1511 = vmatprep.mubr.msk.f32.mxu1 %vm1659_vm0, %v1658_v1 }
  0xd4   : > { %v383_v7 = vpop.f32.mrf.mxu1 }
  0xd5   : > { %v1766_v8 = vadd.f32 %v1431_v6, %v383_v7 }
  0xd6   : > { %v1508_v9 = vpop.f32.mrf.mxu1 }
  0xd7   : > { %552 = vrot.lane.b32.xlu1 %v1766_v8, %s1660_s21  ;;  %388 = vrot.lane.b32.xlu0 %v1766_v8, %s1661_s22  ;;  %v1066_v9 = vld [vmem:[%s1962_s3 + $0x8] sm:$0xff]  ;;  %s1672_s22 = smov 16  }
  0xdb   : > { %719 = vrot.lane.b32.xlu1 %v1766_v8, %s1662_s23  ;;  %554 = vrot.lane.b32.xlu0 %v1766_v8, %s1663_s24  ;;  %s1673_s23 = smov 24  }
  0xdf   : > { %884 = vrot.lane.b32.xlu1 %v1766_v8, %s1664_s25  ;;  %717 = vrot.lane.b32.xlu0 %v1766_v8, %s1665_s26 }
  0xe3   : > { %882 = vrot.lane.b32.xlu0 %v1766_v8, %s1666_s29 }
 0x149   : > { %v553_v10 = vpop.permute.xlu1 %552  ;;  %v389_v11 = vpop.permute.xlu0 %388 }
 0x14a   : > { %1510 = vmatpush3.xpose.msk.msra.mxu1 %vm390_vm2, %v389_v11 }
 0x14b   : > { %1514 = vmatprep.subr.mxu1 %v1658_v1 }
 0x14d   : > { %1512 = vmatmul.mubr.msk.f32.vlgmr.msra.gmra.mxu1 %vm390_vm2, %v1766_v8  ;;  %v555_v12 = vpop.permute.xlu0 %554  ;;  %v720_v13 = vpop.permute.xlu1 %719 }
 0x14e   : > { %1520 = vmatpush3.xpose.msk.msra.mxu0 %vm390_vm2, %v555_v12  ;;  %1516 = vmatprep.mubr.msk.f32.mxu1 %vm1659_vm0, %v1658_v1 }
 0x14f   : > { %1529 = vmatprep.subr.mxu0 %v1658_v1 }
 0x151   : > { %1522 = vmatmul.mubr.msk.f32.vlgmr.msra.gmra.mxu0 %vm390_vm2, %v553_v10  ;;  %v718_v14 = vpop.permute.xlu0 %717  ;;  %v885_v15 = vpop.permute.xlu1 %884  ;;  %v1065_v10 = vld [vmem:[%s1962_s3] sm:$0xff] }
 0x152   : > { %1530 = vmatpush3.xpose.msk.msra.mxu0 %vm390_vm2, %v720_v13  ;;  %1531 = vmatprep.mubr.msk.f32.mxu0 %vm1659_vm0, %v1658_v1 }
 0x153   : > { %1539 = vmatprep.subr.mxu0 %v1658_v1 }
 0x155   : > { %1532 = vmatmul.mubr.msk.f32.vlgmr.msra.gmra.mxu0 %vm390_vm2, %v718_v14  ;;  %v883_v16 = vpop.permute.xlu0 %882 }
 0x156   : > { %1540 = vmatpush3.xpose.msk.msra.mxu0 %vm390_vm2, %v885_v15  ;;  %1541 = vmatprep.mubr.msk.f32.mxu0 %vm1659_vm0, %v1658_v1 }
 0x157   : > { %1571 = vmatprep.subr.mxu0 %v1658_v1 }
 0x159   : > { %1542 = vmatmul.mubr.msk.f32.vlgmr.msra.gmra.mxu0 %vm390_vm2, %v883_v16 }
 0x15a   : > { %1603 = vmatprep.mubr.msk.f32.mxu0 %vm1659_vm0, %v1658_v1 }
 0x20d   : > { %v461_v17 = vpop.f32.mrf.mxu1 }
 0x20e   : > { %v465_v18 = vsel %vm390_vm2, %v461_v17, -inf }
 0x20f   : > { %466 = vmax.xlane.f32.xlu1 %v465_v18  ;;  %v1513_v19 = vpop.f32.mrf.mxu1 }
 0x211   : > { %v626_v20 = vpop.f32.mrf.mxu0 }
 0x212   : > { %v630_v21 = vsel %vm390_vm2, %v626_v20, -inf }
 0x213   : > { %631 = vmax.xlane.f32.xlu0 %v630_v21  ;;  %v1523_v22 = vpop.f32.mrf.mxu0  ;;  %v1069_v21 = vlaneseq }
 0x215   : > { %v791_v23 = vpop.f32.mrf.mxu0  ;;  %v1844_v22 = vshrl.u32 %v1069_v21, 7 }
 0x216   : > { %v795_v24 = vsel %vm390_vm2, %v791_v23, -inf }
 0x217   : > { %796 = vmax.xlane.f32.xlu0 %v795_v24  ;;  %v1533_v25 = vpop.f32.mrf.mxu0  ;;  %v1850_v24 = vld [vmem:[%s1966_s7] sm:$0x3f] }
 0x219   : > { %v956_v26 = vpop.f32.mrf.mxu0 }
 0x21a   : > { %v960_v27 = vsel %vm390_vm2, %v956_v26, -inf }
 0x21b   : > { %v1543_v28 = vpop.f32.mrf.mxu0  ;;  %961 = vmax.xlane.f32.xlu1 %v960_v27 }
 0x22c   : > { %641 = vrot.lane.b32.xlu1 %v1766_v8, %s1667_s30 }
 0x298   : > { %v467_v29 = vpop.xlane.xlu1 %466 }
 0x299   : > { %v468_v30 = vsub.f32 %v461_v17, %v467_v29 }
 0x29b   : > { %v469_v31 = vmul.f32 1.442695, %v468_v30 }
 0x29c   : > { %v632_v32 = vpop.xlane.xlu0 %631 }
 0x29d   : > { %1630 = vpow2.f32 %v469_v31  ;;  %v633_v33 = vsub.f32 %v626_v20, %v632_v32 }
 0x29f   : > { %v634_v34 = vmul.f32 1.442695, %v633_v33 }
 0x2a0   : > { %v797_v44 = vpop.xlane.xlu0 %796 }
 0x2a1   : > { %1632 = vpow2.f32 %v634_v34  ;;  %v798_v45 = vsub.f32 %v791_v23, %v797_v44  ;;  %v1071_v23 = vsub.s32 0, %v1844_v22  ;;  %v1266_v44 = vld [vmem:[%s1965_s6 + $0x50] sm:$0xff] }
 0x2a3   : > { %v799_v46 = vmul.f32 1.442695, %v798_v45  ;;  %v1072_v25 = vrot.slane %v1850_v24, %v1071_v23  ;;  %v1265_v45 = vld [vmem:[%s1965_s6 + $0x48] sm:$0xff] }
 0x2a4   : > { %v962_v35 = vpop.xlane.xlu1 %961 }
 0x2a5   : > { %v963_v36 = vsub.f32 %v956_v26, %v962_v35 }
 0x2a7   : > { %v964_v37 = vmul.f32 1.442695, %v963_v36  ;;  %v1174_v36 = vld [vmem:[%s1963_s4 + $0x18] sm:$0xff] }
 0x2a8   : > { %v642_v49 = vpop.permute.xlu1 %641 }
 0x2a9   : > { %1634 = vpow2.f32 %v964_v37  ;;  %v1173_v37 = vld [vmem:[%s1963_s4 + $0x10] sm:$0xff] }
 0x2aa   : > { %v1631_v38 = vpop.eup %1630  ;;  %1636 = vpow2.f32 %v799_v46  ;;  %v1264_v46 = vld [vmem:[%s1965_s6 + $0x40] sm:$0xff] }
 0x2ab   : > { %v471_v39 = vsel %vm390_vm2, %v1631_v38, 0.0 }
 0x2ac   : > { %472 = vadd.xlane.f32.xlu0 %v471_v39  ;;  %v1271_v39 = vld [vmem:[%s1965_s6 + $0x78] sm:$0xff] }
 0x2ad   : > { %1572 = vmatpush3.msra.mxu0 %v1271_v39 }
 0x2ae   : > { %v1633_v40 = vpop.eup %1632  ;;  %1573 = vmatprep.subr.mxu0 %v1658_v1 }
 0x2af   : > { %v636_v41 = vsel %vm390_vm2, %v1633_v40, 0.0 }
 0x2b0   : > { %637 = vadd.xlane.f32.xlu1 %v636_v41  ;;  %v1269_v41 = vld [vmem:[%s1965_s6 + $0x68] sm:$0xff] }
 0x2b6   : > { %v1635_v42 = vpop.eup %1634 }
 0x2b7   : > { %v966_v43 = vsel %vm390_vm2, %v1635_v42, 0.0  ;;  %v1637_v47 = vpop.eup %1636 }
 0x2b8   : > { %967 = vadd.xlane.f32.xlu1 %v966_v43  ;;  %v801_v48 = vsel %vm390_vm2, %v1637_v47, 0.0  ;;  %v1267_v43 = vld [vmem:[%s1965_s6 + $0x58] sm:$0xff] }
 0x2c2   : > { %476 = vrot.lane.b32.xlu0 %v1766_v8, %s1668_s9 }
 0x2c9   : > { %806 = vrot.lane.b32.xlu1 %v1766_v8, %s1669_s10 }
 0x2e1   : > { %802 = vadd.xlane.f32.xlu0 %v801_v48  ;;  %v1262_v48 = vld [vmem:[%s1965_s6 + $0x30] sm:$0xff] }
 0x2f7   : > { %971 = vrot.lane.b32.xlu0 %v1766_v8, %s1670_s11  ;;  %v1067_v8 = vld [vmem:[%s1962_s3 + $0x10] sm:$0xff] }
 0x335   : > { %v473_v50 = vpop.xlane.xlu0 %472 }
 0x336   : > { %1638 = vrcp.f32 %v473_v50  ;;  %v1260_v50 = vld [vmem:[%s1965_s6 + $0x20] sm:$0xff] }
 0x339   : > { %v477_v51 = vpop.permute.xlu0 %476  ;;  %v638_v52 = vpop.xlane.xlu1 %637 }
 0x33a   : > { %1640 = vrcp.f32 %v638_v52  ;;  %1515 = vmatpush3.msra.mxu1 %v477_v51  ;;  %v1259_v51 = vld [vmem:[%s1965_s6 + $0x18] sm:$0xff] }
 0x33b   : > { %1524 = vmatprep.subr.mxu1 %v1658_v1 }
 0x341   : > { %v968_v54 = vpop.xlane.xlu1 %967 }
 0x343   : > { %v1639_v53 = vpop.eup %1638 }
 0x344   : > { %v475_v55 = vmul.f32 %v1639_v53, %v1631_v38  ;;  %v1171_v38 = vld [vmem:[%s1963_s4] sm:$0xff] }
 0x345   : > { %v807_v58 = vpop.permute.xlu1 %806 }
 0x346   : > { %1517 = vmatmul.mubr.msk.f32.vlgmr.msra.gmra.mxu1 %vm390_vm2, %v475_v55  ;;  %v1163_v55 = vsub.s32 1, %v1844_v22 }
 0x347   : > { %v1641_v56 = vpop.eup %1640  ;;  %1525 = vmatpush3.msra.mxu1 %v642_v49  ;;  %1526 = vmatprep.mubr.msk.f32.mxu1 %vm1659_vm0, %v1658_v1  ;;  %v1261_v49 = vld [vmem:[%s1965_s6 + $0x28] sm:$0xff] }
 0x348   : > { %1534 = vmatprep.subr.mxu1 %v1658_v1  ;;  %v640_v57 = vmul.f32 %v1641_v56, %v1633_v40  ;;  %v1270_v40 = vld [vmem:[%s1965_s6 + $0x70] sm:$0xff]  ;;  %v1168_v56 = vsub.s32 2, %v1844_v22 }
 0x349   : > { %1574 = vmatpush3.msra.mxu0 %v1270_v40 }
 0x34a   : > { %1527 = vmatmul.mubr.msk.f32.vlgmr.msra.gmra.mxu1 %vm390_vm2, %v640_v57  ;;  %1575 = vmatprep.subr.mxu0 %v1658_v1  ;;  %v1164_v57 = vrot.slane %v1850_v24, %v1163_v55 }
 0x34b   : > { %1535 = vmatpush3.msra.mxu1 %v807_v58  ;;  %1536 = vmatprep.mubr.msk.f32.mxu1 %vm1659_vm0, %v1658_v1 }
 0x34c   : > { %1544 = vmatprep.subr.mxu1 %v1658_v1  ;;  %1576 = vmatpush3.msra.mxu0 %v1269_v41 }
 0x34d   : > { %1577 = vmatprep.subr.mxu0 %v1658_v1 }
 0x36a   : > { %v803_v59 = vpop.xlane.xlu0 %802 }
 0x36b   : > { %1642 = vrcp.f32 %v803_v59 }
 0x36c   : > { %1644 = vrcp.f32 %v968_v54 }
 0x36e   : > { %v972_v63 = vpop.permute.xlu0 %971 }
 0x378   : > { %v1643_v60 = vpop.eup %1642 }
 0x379   : > { %v805_v61 = vmul.f32 %v1643_v60, %v1637_v47  ;;  %v1645_v62 = vpop.eup %1644  ;;  %v1263_v47 = vld [vmem:[%s1965_s6 + $0x38] sm:$0xff]  ;;  %v1169_v60 = vrot.slane %v1850_v24, %v1168_v56 }
 0x37a   : > { %v970_v0 = vmul.f32 %v1645_v62, %v1635_v42  ;;  %v1268_v42 = vld [vmem:[%s1965_s6 + $0x60] sm:$0xff] }
 0x37b   : > { %1537 = vmatmul.mubr.msk.f32.vlgmr.msra.gmra.mxu1 %vm390_vm2, %v805_v61  ;;  %1578 = vmatpush3.msra.mxu0 %v1268_v42 }
 0x37c   : > { %1545 = vmatpush3.msra.mxu1 %v972_v63  ;;  %1546 = vmatprep.mubr.msk.f32.mxu1 %vm1659_vm0, %v1658_v1  ;;  %v1258_v63 = vld [vmem:[%s1965_s6 + $0x10] sm:$0xff] }
 0x37d   : > { %1549 = vmatprep.subr.mxu1 %v1658_v1  ;;  %1579 = vmatprep.subr.mxu0 %v1658_v1 }
 0x37e   : > { %1580 = vmatpush3.msra.mxu0 %v1267_v43 }
 0x37f   : > { %1547 = vmatmul.mubr.msk.f32.vlgmr.msra.gmra.mxu1 %vm390_vm2, %v970_v0  ;;  %1581 = vmatprep.subr.mxu0 %v1658_v1  ;;  %v1257_v0 = vld [vmem:[%s1965_s6 + $0x8] sm:$0xff] }
 0x380   : > { %1557 = vmatprep.mubr.msk.f32.mxu1 %vm1659_vm0, %v1658_v1  ;;  %1550 = vmatpush3.msra.mxu1 %v1068_v2  ;;  %v1256_v2 = vld [vmem:[%s1965_s6] sm:$0xff] }
 0x381   : > { %1551 = vmatprep.subr.mxu1 %v1658_v1  ;;  %1582 = vmatpush3.msra.mxu0 %v1266_v44 }
 0x382   : > { %1552 = vmatpush3.msra.mxu1 %v1067_v8  ;;  %1583 = vmatprep.subr.mxu0 %v1658_v1 }
 0x383   : > { %1553 = vmatprep.subr.mxu1 %v1658_v1  ;;  %1584 = vmatpush3.msra.mxu0 %v1265_v45 }
 0x384   : > { %1554 = vmatpush3.msra.mxu1 %v1066_v9  ;;  %1585 = vmatprep.subr.mxu0 %v1658_v1  ;;  %v1274_v9 = vsub.s32 3, %v1844_v22 }
 0x385   : > { %1555 = vmatprep.subr.mxu1 %v1658_v1  ;;  %1586 = vmatpush3.msra.mxu0 %v1264_v46 }
 0x386   : > { %1556 = vmatpush3.msra.mxu1 %v1065_v10  ;;  %1587 = vmatprep.subr.mxu0 %v1658_v1  ;;  %v1275_v10 = vrot.slane %v1850_v24, %v1274_v9 }
 0x387   : > { %1560 = vmatprep.subr.mxu1 %v1658_v1  ;;  %1588 = vmatpush3.msra.mxu0 %v1263_v47 }
 0x388   : > { %1589 = vmatprep.subr.mxu0 %v1658_v1 }
 0x389   : > { %1590 = vmatpush3.msra.mxu0 %v1262_v48 }
 0x38a   : > { %1591 = vmatprep.subr.mxu0 %v1658_v1 }
 0x38b   : > { %1592 = vmatpush3.msra.mxu0 %v1261_v49 }
 0x38c   : > { %1593 = vmatprep.subr.mxu0 %v1658_v1 }
 0x38d   : > { %1594 = vmatpush3.msra.mxu0 %v1260_v50 }
 0x38e   : > { %1595 = vmatprep.subr.mxu0 %v1658_v1 }
 0x38f   : > { %1596 = vmatpush3.msra.mxu0 %v1259_v51 }
 0x390   : > { %1597 = vmatprep.subr.mxu0 %v1658_v1 }
 0x391   : > { %1598 = vmatpush3.msra.mxu0 %v1258_v63 }
 0x392   : > { %1599 = vmatprep.subr.mxu0 %v1658_v1 }
 0x393   : > { %1600 = vmatpush3.msra.mxu0 %v1257_v0 }
 0x394   : > { %1601 = vmatprep.subr.mxu0 %v1658_v1 }
 0x395   : > { %1602 = vmatpush3.msra.mxu0 %v1256_v2 }
 0x406   : > { %v548_v3 = vpop.f32.mrf.mxu1 }
 0x408   : > { %v1518_v4 = vpop.f32.mrf.mxu1 }
 0x40a   : > { %v713_v6 = vpop.f32.mrf.mxu1 }
 0x40b   : > { %1048 = vrot.lane.b32.xlu1 %v713_v6, %s1671_s15 }
 0x40c   : > { %v1528_v7 = vpop.f32.mrf.mxu1 }
 0x43b   : > { %v878_v11 = vpop.f32.mrf.mxu1 }
 0x43c   : > { %1052 = vrot.lane.b32.xlu0 %v878_v11, %s1672_s22 }
 0x43d   : > { %v1538_v12 = vpop.f32.mrf.mxu1 }
 0x43f   : > { %v1043_v13 = vpop.f32.mrf.mxu1 }
 0x440   : > { %1056 = vrot.lane.b32.xlu1 %v1043_v13, %s1673_s23 }
 0x441   : > { %v1548_v14 = vpop.f32.mrf.mxu1 }
 0x47d   : > { %v1049_v15 = vpop.permute.xlu1 %1048 }
 0x47e   : > { %v1059_v17 = vsel %vm390_vm2, %v548_v3, %v1049_v15  ;;  %v1446_v3 = vld [vmem:[%s1964_s5] ss:$0 sm:$0xff] }
 0x4ae   : > { %v1053_v16 = vpop.permute.xlu0 %1052 }
 0x4af   : > { %v1061_v18 = vsel %vm1060_vm3, %v1059_v17, %v1053_v16 }
 0x4b2   : > { %v1057_v19 = vpop.permute.xlu1 %1056 }
 0x4b3   : > { %v1063_v20 = vsel %vm1062_vm4, %v1061_v18, %v1057_v19 }
 0x4b4   : > { %1558 = vmatmul.mubr.msk.f32.vlgmr.msra.gmra.mxu1 %vm313_vm1, %v1063_v20 }
 0x4b5   : > { %1568 = vmatprep.mubr.msk.f32.mxu1 %vm1659_vm0, %v1658_v1  ;;  %1561 = vmatpush3.msra.mxu1 %v1174_v36 }
 0x4b6   : > { %1562 = vmatprep.subr.mxu1 %v1658_v1 }
 0x4b7   : > { %1563 = vmatpush3.msra.mxu1 %v1173_v37 }
 0x4b8   : > { %1564 = vmatprep.subr.mxu1 %v1658_v1 }
 0x574   : > { %v1142_v26 = vpop.f32.mrf.mxu1 }
 0x575   : > { %v1143_v27 = vadd.f32 %v1142_v26, %v1072_v25  ;;  %v1362_v25 = vsub.s32 4, %v1844_v22  ;;  %v1367_v26 = vsub.s32 5, %v1844_v22 }
 0x576   : > { %v1559_v28 = vpop.f32.mrf.mxu1 }
 0x577   : > { %v1146_v29 = vadd.f32 %v1143_v27, %v1755_v5  ;;  %v1172_v5 = vld [vmem:[%s1963_s4 + $0x8] sm:$0xff]  ;;  %v1363_v27 = vrot.slane %v1850_v24, %v1362_v25 }
 0x578   : > { %1565 = vmatpush3.msra.mxu1 %v1172_v5 }
 0x579   : > { %v1147_v30 = vsel %vm313_vm1, %v1146_v29, 0.0  ;;  %1566 = vmatprep.subr.mxu1 %v1658_v1 }
 0x57a   : > { %1148 = vadd.xlane.f32.xlu0 %v1147_v30  ;;  %1567 = vmatpush3.msra.mxu1 %v1171_v38 }
 0x603   : > { %v1149_v31 = vpop.xlane.xlu0 %1148 }
 0x604   : > { %v1151_v32 = vmul.f32 0.03125, %v1149_v31 }
 0x606   : > { %v1152_v33 = vsub.f32 %v1146_v29, %v1151_v32  ;;  %v1368_v29 = vrot.slane %v1850_v24, %v1367_v26 }
 0x608   : > { %v1153_v34 = vmul.f32 %v1152_v33, %v1152_v33 }
 0x60a   : > { %v1154_v35 = vsel %vm313_vm1, %v1153_v34, 0.0 }
 0x60b   : > { %1155 = vadd.xlane.f32.xlu1 %v1154_v35 }
 0x694   : > { %v1156_v52 = vpop.xlane.xlu1 %1155 }
 0x695   : > { %v1157_v53 = vmul.f32 0.03125, %v1156_v52 }
 0x697   : > { %v1158_v54 = vadd.f32 1e-05, %v1157_v53 }
 0x699   : > { %1646 = vrsqrt.f32 %v1158_v54 }
 0x6a6   : > { %v1647_v58 = vpop.eup %1646 }
 0x6a7   : > { %v1160_v59 = vmul.f32 %v1647_v58, %v1152_v33 }
 0x6a9   : > { %v1165_v61 = vmul.f32 %v1164_v57, %v1160_v59 }
 0x6ab   : > { %v1170_v62 = vadd.f32 %v1169_v60, %v1165_v61 }
 0x6ad   : > { %1569 = vmatmul.mubr.msk.f32.vlgmr.msra.gmra.mxu1 %vm313_vm1, %v1170_v62 }
 0x76d   : > { %v1251_v4 = vpop.f32.mrf.mxu1 }
 0x76e   : > { %v1252_v6 = vadd.f32 %v1446_v3, %v1251_v4 }
 0x76f   : > { %v1570_v7 = vpop.f32.mrf.mxu1 }
 0x770   : > { %v1255_v8 = vmax.f32 %v1252_v6, 0.0 }
 0x772   : > { %1604 = vmatmul.mubr.f32.vlgmr.msra.gmra.mxu0 %v1255_v8 }
 0x832   : > { %v1342_v11 = vpop.f32.mrf.mxu0 }
 0x833   : > { %v1343_v12 = vadd.f32 %v1342_v11, %v1275_v10 }
 0x834   : > { %v1605_v13 = vpop.f32.mrf.mxu0 }
 0x835   : > { %v1346_v14 = vadd.f32 %v1343_v12, %v1170_v62 }
 0x837   : > { %v1347_v1 = vsel %vm313_vm1, %v1346_v14, 0.0 }
 0x838   : > { %1348 = vadd.xlane.f32.xlu0 %v1347_v1 }
 0x8c1   : > { %v1349_v15 = vpop.xlane.xlu0 %1348 }
 0x8c2   : > { %v1350_v16 = vmul.f32 0.03125, %v1349_v15 }
 0x8c4   : > { %v1351_v17 = vsub.f32 %v1346_v14, %v1350_v16 }
 0x8c6   : > { %v1352_v18 = vmul.f32 %v1351_v17, %v1351_v17 }
 0x8c8   : > { %v1353_v19 = vsel %vm313_vm1, %v1352_v18, 0.0 }
 0x8c9   : > { %1354 = vadd.xlane.f32.xlu0 %v1353_v19 }
 0x952   : > { %v1355_v20 = vpop.xlane.xlu0 %1354 }
 0x953   : > { %v1356_v21 = vmul.f32 0.03125, %v1355_v20 }
 0x955   : > { %v1357_v23 = vadd.f32 1e-05, %v1356_v21 }
 0x957   : > { %1648 = vrsqrt.f32 %v1357_v23 }
 0x964   : > { %v1649_v28 = vpop.eup %1648 }
 0x965   : > { %v1359_v30 = vmul.f32 %v1649_v28, %v1351_v17 }
 0x967   : > { %v1364_v31 = vmul.f32 %v1363_v27, %v1359_v30 }
 0x969   : > { %v1369_v32 = vadd.f32 %v1368_v29, %v1364_v31 }
 0x96b   : > { %1370 = vst.msk [vmem:[%s300_s12] sm:$0xff] %vm313_vm1, %v1369_v32 }
 0x96c PF: > { %s18_s27 = sadd.s32 1, %s1656_s27  }
 0x96d   : > { %p15_p4 = scmp.ge.s32.totalorder %s18_s27, 4  }
 0x96f   :  { %17 = sbr.rel (!%p15_p4) target bundleno = 1 (0x1), region = 82 }

</bundles_post_ra>
